<compile_context>
chip_gen: v7x
topology: tpu7x:2x2x1
jax: 0.10.0
libtpu: 0.0.40
codegen_flags: <defaults>
</compile_context>

<pallas_src>
import functools

import jax
import jax.numpy as jnp
from jax.experimental import pallas as pl
from jax.experimental.pallas import tpu as pltpu

EPS = 1e-5  # PyTorch BatchNorm2d default eps


# --------------------------------------------------------------------------- #
# Pallas kernel: whole ValueHead forward, gridded over channel chunks.
# --------------------------------------------------------------------------- #
def _value_head_kernel(params_ref, x_ref, w1_ref, b1_ref, w2_ref, o_ref,
                       acc_ref, *, c_total):
    """Refs:
      params_ref: (C + 3,) SMEM  = [w_conv[0..C-1], bn_gamma, bn_beta, b_lin2]
                  (conv bias intentionally dropped: cancelled by BN mean)
      x_ref     : (N, Cblk, P) VMEM block of x, P = H*W on the lane axis
      w1_ref    : (Hpad, P)   VMEM  -- linear1 weight, UNtransposed, zero-padded
      b1_ref    : (1, Hpad)   VMEM
      w2_ref    : (1, Hpad)   VMEM  -- linear2 weight row, zero-padded
      o_ref     : (N, 1)      VMEM
      acc_ref   : (N, P) f32  VMEM scratch -- conv accumulator across the grid
    """
    cb = pl.program_id(0)
    n_cb = pl.num_programs(0)
    N, Cblk, P = x_ref.shape

    @pl.when(cb == 0)
    def _init():
        acc_ref[...] = jnp.zeros_like(acc_ref)

    # ---- 1x1 conv (C -> 1 channel): scalar-weight VPU MAC over this chunk ----
    # Cblk is kept small by the wrapper, so a static unrolled loop is fine.
    base = cb * Cblk
    part = params_ref[base] * x_ref[:, 0, :].astype(jnp.float32)      # (N, P)
    for c in range(1, Cblk):
        part = part + params_ref[base + c] * x_ref[:, c, :].astype(jnp.float32)
    acc_ref[...] += part

    # ---- epilogue on the last channel chunk: BN -> ReLU -> L1 -> ReLU -> L2 -> tanh
    @pl.when(cb == n_cb - 1)
    def _epilogue():
        z = acc_ref[...]                                               # (N, P)

        # BatchNorm2d(1), training-mode batch stats over all N*H*W, one pass
        # (E[z^2] - E[z]^2, clamped >= 0).
        inv = 1.0 / float(N * P)
        s1 = jnp.sum(z, axis=1, keepdims=True)                         # (N, 1)
        s2 = jnp.sum(z * z, axis=1, keepdims=True)                     # (N, 1)
        mean = jnp.sum(s1, axis=0, keepdims=True) * inv                # (1, 1)
        ex2 = jnp.sum(s2, axis=0, keepdims=True) * inv                 # (1, 1)
        var = jnp.maximum(ex2 - mean * mean, 0.0)

        gamma = params_ref[c_total]
        beta = params_ref[c_total + 1]
        b2 = params_ref[c_total + 2]

        scale = gamma * jax.lax.rsqrt(var + EPS)                       # (1, 1)
        shift = beta - mean * scale
        zn = jnp.maximum(z * scale + shift, 0.0)                       # (N, P)

        # linear1 + ReLU: the one real MXU matmul, fp32 accumulate, w1 consumed
        # untransposed (contract z dim 1 with w1 dim 1).
        h = jax.lax.dot_general(zn, w1_ref[...],
                                (((1,), (1,)), ((), ())),
                                preferred_element_type=jnp.float32)    # (N, Hpad)
        h = jnp.maximum(h + b1_ref[...], 0.0)

        # linear2 (hidden -> 1): VPU multiply + lane reduce, then tanh.
        v = jnp.sum(h * w2_ref[...], axis=1, keepdims=True) + b2       # (N, 1)
        o_ref[...] = jnp.tanh(v)


# --------------------------------------------------------------------------- #
# Channel-chunk sizing: a few MB per double-buffered block, divide C exactly,
# keep the in-kernel unroll bounded.
# --------------------------------------------------------------------------- #
def _pick_channel_block(C, N, P, itemsize, target_bytes=4 << 20, max_unroll=64):
    per_chan = max(1, N * P * itemsize)
    max_c = max(1, min(max_unroll, target_bytes // per_chan))
    if C <= max_c:
        return C
    for cand in range(int(max_c), 0, -1):
        # second-minor block dim must be a multiple of 8 (or the full extent)
        if C % cand == 0 and cand % 8 == 0:
            return cand
    return C  # fallback: whole channel axis in one block


# --------------------------------------------------------------------------- #
# Wrapper: layout plumbing + pallas_call.
# --------------------------------------------------------------------------- #
def value_head_forward(x_nchw, w_conv, b_conv, gamma, beta, w1, b1, w2, b2):
    """Pallas implementation of ValueHead.forward (training-mode BatchNorm).

    x_nchw : (N, C, H, W)
    w_conv : (1, C, 1, 1), b_conv: (1,)      -- nn.Conv2d(C, 1, 1, 1)
    gamma, beta : (1,)                       -- nn.BatchNorm2d(1)
    w1 : (hidden, H*W), b1 : (hidden,)       -- nn.Linear(H*W, hidden)
    w2 : (1, hidden),   b2 : (1,)            -- nn.Linear(hidden, 1)
    returns (N, 1) float32
    """
    N, C, H, W = x_nchw.shape
    P = H * W
    hidden = w1.shape[0]
    hidden_pad = max(128, ((hidden + 127) // 128) * 128)   # lane-dense hidden

    # Collapse spatial dims only (contiguous, no relayout); NO transpose — the
    # kernel's BlockSpec walks the channel axis of the native layout.
    x3 = x_nchw.reshape(N, C, P)
    itemsize = jnp.dtype(x3.dtype).itemsize

    # Zero-pad hidden: relu(0 + 0) = 0 and zero w2 columns contribute nothing,
    # so the padded lanes never change the result.
    w1p = jnp.pad(w1.astype(jnp.float32), ((0, hidden_pad - hidden), (0, 0)))
    b1p = jnp.pad(b1.astype(jnp.float32),
                  (0, hidden_pad - hidden)).reshape(1, hidden_pad)
    w2p = jnp.pad(w2.astype(jnp.float32).reshape(-1),
                  (0, hidden_pad - hidden)).reshape(1, hidden_pad)

    # One small scalar-prefetch array: conv weights + gamma + beta + b_lin2.
    # Conv bias is dropped (exactly cancelled by the BN mean subtraction).
    params = jnp.concatenate([
        jnp.reshape(w_conv, (C,)).astype(jnp.float32),
        jnp.stack([jnp.reshape(gamma, ()), jnp.reshape(beta, ()),
                   jnp.reshape(b2, ())]).astype(jnp.float32),
    ])                                                        # (C + 3,)

    cblk = _pick_channel_block(C, N, P, itemsize)
    grid = (C // cblk,)

    kernel = functools.partial(_value_head_kernel, c_total=C)

    # VMEM budget: double-buffered x block + accumulator/epilogue temp + weights,
    # generous headroom but well under v7x's 64 MiB physical VMEM.
    need = (2 * N * cblk * P * itemsize
            + 2 * N * P * 4
            + hidden_pad * P * 4 + 4 * hidden_pad * 4
            + N * 4)
    vmem_limit = int(min(48 << 20, max(8 << 20, 2 * need)))

    flops = (2 * N * P * C            # conv MACs
             + 10 * N * P             # BN + ReLU passes
             + 2 * N * P * hidden_pad # linear1
             + 2 * N * hidden_pad)    # linear2
    bytes_accessed = (N * C * P * itemsize + hidden_pad * P * 4
                      + 2 * hidden_pad * 4 + (C + 3) * 4 + N * 4)

    return pl.pallas_call(
        kernel,
        out_shape=jax.ShapeDtypeStruct((N, 1), jnp.float32),
        grid_spec=pltpu.PrefetchScalarGridSpec(
            num_scalar_prefetch=1,
            grid=grid,
            in_specs=[
                pl.BlockSpec((N, cblk, P), lambda c, p: (0, c, 0)),     # x block
                pl.BlockSpec((hidden_pad, P), lambda c, p: (0, 0)),     # w1 (resident)
                pl.BlockSpec((1, hidden_pad), lambda c, p: (0, 0)),     # b1 row
                pl.BlockSpec((1, hidden_pad), lambda c, p: (0, 0)),     # w2 row
            ],
            out_specs=pl.BlockSpec((N, 1), lambda c, p: (0, 0)),
            scratch_shapes=[pltpu.VMEM((N, P), jnp.float32)],           # conv acc
        ),
        compiler_params=pltpu.CompilerParams(
            dimension_semantics=("arbitrary",),       # channel axis is a reduction
            vmem_limit_bytes=vmem_limit,
        ),
        cost_estimate=pl.CostEstimate(
            flops=flops, transcendentals=N + 1, bytes_accessed=bytes_accessed),
    )(params, x3, w1p, b1p, w2p)


# --------------------------------------------------------------------------- #
# Pure-JAX reference (mirrors the PyTorch forward, training-mode BatchNorm).
# --------------------------------------------------------------------------- #
def reference_forward(x, w_conv, b_conv, gamma, beta, w1, b1, w2, b2):
    z = jax.lax.conv_general_dilated(
        x, w_conv, window_strides=(1, 1), padding="VALID",
        dimension_numbers=("NCHW", "OIHW", "NCHW")) + b_conv[None, :, None, None]
    mean = jnp.mean(z, axis=(0, 2, 3), keepdims=True)
    var = jnp.mean((z - mean) ** 2, axis=(0, 2, 3), keepdims=True)
    z = (z - mean) * jax.lax.rsqrt(var + EPS) * gamma[None, :, None, None] \
        + beta[None, :, None, None]
    z = jnp.maximum(z, 0.0)
    z = z.reshape(x.shape[0], -1)                      # flatten(out, 1)
    h = jnp.maximum(z @ w1.T + b1, 0.0)
    return jnp.tanh(h @ w2.T + b2)


# --------------------------------------------------------------------------- #
if __name__ == "__main__":
    key = jax.random.PRNGKey(0)
    N, n_filters, edge, hidden = 2, 4, 16, 32
    P = edge * edge
    ks = jax.random.split(key, 7)

    x = jax.random.normal(ks[0], (N, n_filters, edge, edge), jnp.float32)
    w_conv = jax.random.normal(ks[1], (1, n_filters, 1, 1), jnp.float32) * 0.1
    b_conv = jax.random.normal(ks[2], (1,), jnp.float32) * 0.1
    gamma = jnp.ones((1,), jnp.float32)    # BatchNorm2d default affine init
    beta = jnp.zeros((1,), jnp.float32)
    w1 = jax.random.normal(ks[3], (hidden, P), jnp.float32) * 0.1
    b1 = jax.random.normal(ks[4], (hidden,), jnp.float32) * 0.1
    w2 = jax.random.normal(ks[5], (1, hidden), jnp.float32) * 0.1
    b2 = jax.random.normal(ks[6], (1,), jnp.float32) * 0.1

    out = value_head_forward(x, w_conv, b_conv, gamma, beta, w1, b1, w2, b2)
    out = jax.block_until_ready(out)

    ref = reference_forward(x, w_conv, b_conv, gamma, beta, w1, b1, w2, b2)
    assert out.shape == (N, 1) and out.dtype == jnp.float32
    max_err = float(jnp.max(jnp.abs(out - ref)))
    if not bool(jnp.allclose(out, ref, atol=1e-4, rtol=1e-4)):
        raise AssertionError(f"Pallas kernel mismatch vs reference, max |err| = {max_err:e}")
    print("KERNEL_OK")
</pallas_src>

<mosaic_0001>
module attributes {stable_mosaic.version = 11 : i64} {
  func.func @_value_head_kernel(%arg0: i32, %arg1: memref<7xf32, #tpu.memory_space<smem>>, %arg2: memref<2x4x256xf32, #tpu.memory_space<vmem>>, %arg3: memref<128x256xf32, #tpu.memory_space<vmem>>, %arg4: memref<1x128xf32, #tpu.memory_space<vmem>>, %arg5: memref<1x128xf32, #tpu.memory_space<vmem>>, %arg6: memref<2x1xf32, #tpu.memory_space<vmem>>, %arg7: memref<2x256xf32, #tpu.memory_space<vmem>>) attributes {dimension_semantics = [#tpu.dimension_semantics<arbitrary>], iteration_bounds = array<i64: 1>, scalar_prefetch = 1 : i64, scratch_operands = 1 : i64, tpu.core_type = #tpu.core_type<tc>, window_params = [{transform_indices = @transform_0, window_bounds = array<i64: 2, 4, 256>}, {pipeline_mode = #tpu.pipeline_mode<synchronous>, transform_indices = @transform_1, window_bounds = array<i64: 128, 256>}, {pipeline_mode = #tpu.pipeline_mode<synchronous>, transform_indices = @transform_2, window_bounds = array<i64: 1, 128>}, {pipeline_mode = #tpu.pipeline_mode<synchronous>, transform_indices = @transform_3, window_bounds = array<i64: 1, 128>}, {pipeline_mode = #tpu.pipeline_mode<synchronous>, transform_indices = @transform_4, window_bounds = array<i64: 2, 1>}]} {
    %c0_i32 = arith.constant 0 : i32
    %0 = arith.cmpi eq, %arg0, %c0_i32 : i32
    %1 = arith.extui %0 : i1 to i32
    %c0_i32_0 = arith.constant 0 : i32
    %2 = arith.cmpi ne, %1, %c0_i32_0 : i32
    scf.if %2 {
      %cst = arith.constant 0.000000e+00 : f32
      %40 = vector.broadcast %cst : f32 to vector<2x256xf32>
      %c0_15 = arith.constant 0 : index
      %c0_16 = arith.constant 0 : index
      %41 = vector.load %arg7[%c0_15, %c0_16] : memref<2x256xf32, #tpu.memory_space<vmem>>, vector<2x256xf32>
      tpu.vector_store %arg7[%c0_15, %c0_16], %40 {strides = array<i32>} : memref<2x256xf32, #tpu.memory_space<vmem>>, vector<2x256xf32>,
    } else {
    }
    %c4_i32 = arith.constant 4 : i32
    %3 = arith.muli %arg0, %c4_i32 : i32
    %4 = arith.index_cast %3 : i32 to index
    %5 = memref.load %arg1[%4] : memref<7xf32, #tpu.memory_space<smem>>
    %c0 = arith.constant 0 : index
    %c0_1 = arith.constant 0 : index
    %c0_2 = arith.constant 0 : index
    %6 = vector.load %arg2[%c0, %c0_1, %c0_2] : memref<2x4x256xf32, #tpu.memory_space<vmem>>, vector<2x1x256xf32>
    %7 = vector.shape_cast %6 : vector<2x1x256xf32> to vector<2x256xf32>
    %8 = vector.broadcast %5 : f32 to vector<2x256xf32>
    %9 = arith.mulf %8, %7 : vector<2x256xf32>
    %c1_i32 = arith.constant 1 : i32
    %10 = arith.addi %3, %c1_i32 : i32
    %11 = arith.index_cast %10 : i32 to index
    %12 = memref.load %arg1[%11] : memref<7xf32, #tpu.memory_space<smem>>
    %c0_3 = arith.constant 0 : index
    %c1 = arith.constant 1 : index
    %c0_4 = arith.constant 0 : index
    %13 = vector.load %arg2[%c0_3, %c1, %c0_4] : memref<2x4x256xf32, #tpu.memory_space<vmem>>, vector<2x1x256xf32>
    %14 = vector.shape_cast %13 : vector<2x1x256xf32> to vector<2x256xf32>
    %15 = vector.broadcast %12 : f32 to vector<2x256xf32>
    %16 = arith.mulf %15, %14 : vector<2x256xf32>
    %17 = arith.addf %9, %16 : vector<2x256xf32>
    %c2_i32 = arith.constant 2 : i32
    %18 = arith.addi %3, %c2_i32 : i32
    %19 = arith.index_cast %18 : i32 to index
    %20 = memref.load %arg1[%19] : memref<7xf32, #tpu.memory_space<smem>>
    %c0_5 = arith.constant 0 : index
    %c2 = arith.constant 2 : index
    %c0_6 = arith.constant 0 : index
    %21 = vector.load %arg2[%c0_5, %c2, %c0_6] : memref<2x4x256xf32, #tpu.memory_space<vmem>>, vector<2x1x256xf32>
    %22 = vector.shape_cast %21 : vector<2x1x256xf32> to vector<2x256xf32>
    %23 = vector.broadcast %20 : f32 to vector<2x256xf32>
    %24 = arith.mulf %23, %22 : vector<2x256xf32>
    %25 = arith.addf %17, %24 : vector<2x256xf32>
    %c3_i32 = arith.constant 3 : i32
    %26 = arith.addi %3, %c3_i32 : i32
    %27 = arith.index_cast %26 : i32 to index
    %28 = memref.load %arg1[%27] : memref<7xf32, #tpu.memory_space<smem>>
    %c0_7 = arith.constant 0 : index
    %c3 = arith.constant 3 : index
    %c0_8 = arith.constant 0 : index
    %29 = vector.load %arg2[%c0_7, %c3, %c0_8] : memref<2x4x256xf32, #tpu.memory_space<vmem>>, vector<2x1x256xf32>
    %30 = vector.shape_cast %29 : vector<2x1x256xf32> to vector<2x256xf32>
    %31 = vector.broadcast %28 : f32 to vector<2x256xf32>
    %32 = arith.mulf %31, %30 : vector<2x256xf32>
    %33 = arith.addf %25, %32 : vector<2x256xf32>
    %c0_9 = arith.constant 0 : index
    %c0_10 = arith.constant 0 : index
    %34 = vector.load %arg7[%c0_9, %c0_10] : memref<2x256xf32, #tpu.memory_space<vmem>>, vector<2x256xf32>
    %35 = arith.addf %34, %33 : vector<2x256xf32>
    %c0_11 = arith.constant 0 : index
    %c0_12 = arith.constant 0 : index
    %36 = vector.load %arg7[%c0_11, %c0_12] : memref<2x256xf32, #tpu.memory_space<vmem>>, vector<2x256xf32>
    tpu.vector_store %arg7[%c0_11, %c0_12], %35 {strides = array<i32>} : memref<2x256xf32, #tpu.memory_space<vmem>>, vector<2x256xf32>,
    %c0_i32_13 = arith.constant 0 : i32
    %37 = arith.cmpi eq, %arg0, %c0_i32_13 : i32
    %38 = arith.extui %37 : i1 to i32
    %c0_i32_14 = arith.constant 0 : i32
    %39 = arith.cmpi ne, %38, %c0_i32_14 : i32
    scf.if %39 {
      %c0_15 = arith.constant 0 : index
      %c0_16 = arith.constant 0 : index
      %40 = vector.load %arg7[%c0_15, %c0_16] : memref<2x256xf32, #tpu.memory_space<vmem>>, vector<2x256xf32>
      %cst = arith.constant dense<0.000000e+00> : vector<2xf32>
      %41 = vector.multi_reduction <add>, %40, %cst [1] : vector<2x256xf32> to vector<2xf32>
      %42 = vector.shape_cast %41 : vector<2xf32> to vector<2x1xf32>
      %43 = arith.mulf %40, %40 : vector<2x256xf32>
      %cst_17 = arith.constant dense<0.000000e+00> : vector<2xf32>
      %44 = vector.multi_reduction <add>, %43, %cst_17 [1] : vector<2x256xf32> to vector<2xf32>
      %45 = vector.shape_cast %44 : vector<2xf32> to vector<2x1xf32>
      %cst_18 = arith.constant dense<0.000000e+00> : vector<1xf32>
      %46 = vector.multi_reduction <add>, %42, %cst_18 [0] : vector<2x1xf32> to vector<1xf32>
      %47 = vector.shape_cast %46 : vector<1xf32> to vector<1x1xf32>
      %cst_19 = arith.constant 0.001953125 : f32
      %48 = vector.broadcast %cst_19 : f32 to vector<1x1xf32>
      %49 = arith.mulf %47, %48 : vector<1x1xf32>
      %cst_20 = arith.constant dense<0.000000e+00> : vector<1xf32>
      %50 = vector.multi_reduction <add>, %45, %cst_20 [0] : vector<2x1xf32> to vector<1xf32>
      %51 = vector.shape_cast %50 : vector<1xf32> to vector<1x1xf32>
      %cst_21 = arith.constant 0.001953125 : f32
      %52 = vector.broadcast %cst_21 : f32 to vector<1x1xf32>
      %53 = arith.mulf %51, %52 : vector<1x1xf32>
      %54 = arith.mulf %49, %49 : vector<1x1xf32>
      %55 = arith.subf %53, %54 : vector<1x1xf32>
      %cst_22 = arith.constant 0.000000e+00 : f32
      %56 = vector.broadcast %cst_22 : f32 to vector<1x1xf32>
      %57 = arith.maximumf %55, %56 : vector<1x1xf32>
      %c4 = arith.constant 4 : index
      %58 = memref.load %arg1[%c4] : memref<7xf32, #tpu.memory_space<smem>>
      %c5 = arith.constant 5 : index
      %59 = memref.load %arg1[%c5] : memref<7xf32, #tpu.memory_space<smem>>
      %c6 = arith.constant 6 : index
      %60 = memref.load %arg1[%c6] : memref<7xf32, #tpu.memory_space<smem>>
      %cst_23 = arith.constant 9.99999974E-6 : f32
      %61 = vector.broadcast %cst_23 : f32 to vector<1x1xf32>
      %62 = arith.addf %57, %61 : vector<1x1xf32>
      %63 = math.rsqrt %62 : vector<1x1xf32>
      %64 = vector.broadcast %58 : f32 to vector<1x1xf32>
      %65 = arith.mulf %64, %63 : vector<1x1xf32>
      %66 = arith.mulf %49, %65 : vector<1x1xf32>
      %67 = vector.broadcast %59 : f32 to vector<1x1xf32>
      %68 = arith.subf %67, %66 : vector<1x1xf32>
      %69 = vector.broadcast %65 : vector<1x1xf32> to vector<2x256xf32>
      %70 = arith.mulf %40, %69 : vector<2x256xf32>
      %71 = vector.broadcast %68 : vector<1x1xf32> to vector<2x256xf32>
      %72 = arith.addf %70, %71 : vector<2x256xf32>
      %cst_24 = arith.constant 0.000000e+00 : f32
      %73 = vector.broadcast %cst_24 : f32 to vector<2x256xf32>
      %74 = arith.maximumf %72, %73 : vector<2x256xf32>
      %c0_25 = arith.constant 0 : index
      %c0_26 = arith.constant 0 : index
      %75 = vector.load %arg3[%c0_25, %c0_26] : memref<128x256xf32, #tpu.memory_space<vmem>>, vector<128x256xf32>
      %cst_27 = arith.constant dense<0.000000e+00> : vector<2x128xf32>
      %76 = tpu.matmul %74, %75, %cst_27 {dimension_numbers = #tpu.dot_dimension_numbers<[1], [1], [0], [0], [0, 0, 1, 0], [], []>} : vector<2x256xf32>, vector<128x256xf32>, vector<2x128xf32> -> vector<2x128xf32>
      %c0_28 = arith.constant 0 : index
      %c0_29 = arith.constant 0 : index
      %77 = vector.load %arg4[%c0_28, %c0_29] : memref<1x128xf32, #tpu.memory_space<vmem>>, vector<1x128xf32>
      %78 = vector.broadcast %77 : vector<1x128xf32> to vector<2x128xf32>
      %79 = arith.addf %76, %78 : vector<2x128xf32>
      %cst_30 = arith.constant 0.000000e+00 : f32
      %80 = vector.broadcast %cst_30 : f32 to vector<2x128xf32>
      %81 = arith.maximumf %79, %80 : vector<2x128xf32>
      %c0_31 = arith.constant 0 : index
      %c0_32 = arith.constant 0 : index
      %82 = vector.load %arg5[%c0_31, %c0_32] : memref<1x128xf32, #tpu.memory_space<vmem>>, vector<1x128xf32>
      %83 = vector.broadcast %82 : vector<1x128xf32> to vector<2x128xf32>
      %84 = arith.mulf %81, %83 : vector<2x128xf32>
      %cst_33 = arith.constant dense<0.000000e+00> : vector<2xf32>
      %85 = vector.multi_reduction <add>, %84, %cst_33 [1] : vector<2x128xf32> to vector<2xf32>
      %86 = vector.shape_cast %85 : vector<2xf32> to vector<2x1xf32>
      %87 = vector.broadcast %60 : f32 to vector<2x1xf32>
      %88 = arith.addf %86, %87 : vector<2x1xf32>
      %89 = math.tanh %88 : vector<2x1xf32>
      %c0_34 = arith.constant 0 : index
      %c0_35 = arith.constant 0 : index
      %90 = vector.load %arg6[%c0_34, %c0_35] : memref<2x1xf32, #tpu.memory_space<vmem>>, vector<2x1xf32>
      tpu.vector_store %arg6[%c0_34, %c0_35], %89 {strides = array<i32>} : memref<2x1xf32, #tpu.memory_space<vmem>>, vector<2x1xf32>,
    } else {
    }
    return
  }
  func.func @transform_0(%arg0: i32, %arg1: memref<7xf32, #tpu.memory_space<smem>>) -> (i32, i32, i32) {
    %c0_i32 = arith.constant 0 : i32
    %c0_i32_0 = arith.constant 0 : i32
    %c0_i32_1 = arith.constant 0 : i32
    return %c0_i32, %arg0, %c0_i32_0 : i32, i32, i32
  }
  func.func @transform_1(%arg0: i32, %arg1: memref<7xf32, #tpu.memory_space<smem>>) -> (i32, i32) {
    %c0_i32 = arith.constant 0 : i32
    %c0_i32_0 = arith.constant 0 : i32
    %c0_i32_1 = arith.constant 0 : i32
    return %c0_i32, %c0_i32_0 : i32, i32
  }
  func.func @transform_2(%arg0: i32, %arg1: memref<7xf32, #tpu.memory_space<smem>>) -> (i32, i32) {
    %c0_i32 = arith.constant 0 : i32
    %c0_i32_0 = arith.constant 0 : i32
    %c0_i32_1 = arith.constant 0 : i32
    return %c0_i32, %c0_i32_0 : i32, i32
  }
  func.func @transform_3(%arg0: i32, %arg1: memref<7xf32, #tpu.memory_space<smem>>) -> (i32, i32) {
    %c0_i32 = arith.constant 0 : i32
    %c0_i32_0 = arith.constant 0 : i32
    %c0_i32_1 = arith.constant 0 : i32
    return %c0_i32, %c0_i32_0 : i32, i32
  }
  func.func @transform_4(%arg0: i32, %arg1: memref<7xf32, #tpu.memory_space<smem>>) -> (i32, i32) {
    %c0_i32 = arith.constant 0 : i32
    %c0_i32_0 = arith.constant 0 : i32
    %c0_i32_1 = arith.constant 0 : i32
    return %c0_i32, %c0_i32_0 : i32, i32
  }
}

</mosaic_0001>

<bundles_post_ra>
// kernel: tpu_custom_call.1
= control target key start
LH: loop header
LB: loop body
LE: loop exit
PB: predicated region body
PF: predicated region fallthrough
CT: control target
= control target key end

     0   :  { %s540_s0 = inlined_call_operand.hbm [shape: f32[7], index: 0, kind: input, shape index: {}]   ;;  %s541_s1 = inlined_call_operand.hbm [shape: f32[2,4,256], index: 1, kind: input, shape index: {}]   ;;  %s542_s2 = inlined_call_operand.hbm [shape: f32[128,256], index: 2, kind: input, shape index: {}]   ;;  %s543_s3 = inlined_call_operand.vmem [shape: f32[1,128], index: 3, kind: input, shape index: {}]   ;;  %s544_s4 = inlined_call_operand.vmem [shape: f32[1,128], index: 4, kind: input, shape index: {}]   ;;  %s545_s5 = inlined_call_operand.vmem [shape: f32[2,1], index: 5, kind: output, shape index: {}]  }
   0x1   :  { %s377_s20 = scalar_lea.hbm %s540_s0, 16 }
   0x2   :  { %p378_p0 = scmp.ne.s32.totalorder %s540_s0, %s377_s20  ;;  %p381_p1 = scmp.lt.u32.totalorder %s377_s20, %s540_s0 }
   0x4   :  { %p383_p2 = pnand %p381_p1, %p378_p0 }
   0x6   :  { %386 = shalt.err (!%p383_p2)  }
   0x7   :  { %s437_s25 = smov [#allocation4]  }
   0x8   :  { %11 = dma.hbm_to_smem %s540_s0, 16, %s437_s25, [#allocation3] }
   0x9   :  { %431 = dma.done.wait [#allocation3], 16 }
   0xa   :  { %432 = vsyncadd [#allocation3], 4294967280 }
   0xb   :  { %13 = sfence }
   0xc   :  { %14 = vsyncpa [#allocation6], 0 }
   0xd   :  { %15 = vsyncpa [#allocation8], 0  ;;  %s438_s28 = smov [#allocation5]   ;;  %s387_s7 = scalar_lea.hbm %s541_s1, 256 }
   0xe   :  { %s21_s29 = sshll.u32 %s438_s28, 4  ;;  %p388_p3 = scmp.ne.s32.totalorder %s541_s1, %s387_s7  ;;  %s22_s29 = int_to_ptr.vmem [resolvable:$true] %s21_s29 }
   0xf   :  { %p391_p4 = scmp.lt.u32.totalorder %s387_s7, %s541_s1 }
  0x11   :  { %p393_p5 = pnand %p391_p4, %p388_p3 }
  0x13   :  { %396 = shalt.err (!%p393_p5)
}
  0x14   :  { %s397_s0 = scalar_lea.vmem %s22_s29, 256  ;;  %p402_p7 = scmp.lt.s32.totalorder %s22_s29, %s22_s29 }
  0x15   :  { %p398_p6 = scmp.ne.s32.totalorder %s22_s29, %s397_s0  ;;  %p403_p8 = scmp.lt.s32.totalorder %s397_s0, %s397_s0 }
  0x17   :  { %p404_p9 = por %p403_p8, %p402_p7 }
  0x19   :  { %p405_p10 = pnand %p404_p9, %p398_p6 }
  0x1b   :  { %408 = shalt.err (!%p405_p10)
}
  0x1c   :  { %s439_s12 = smov 128   ;;  %s440_s13 = smov 8  }
  0x1d   :  { %27 = dma.hbm_to_vmem [thread:$0]  %s541_s1, 256, %s22_s29, [#allocation6], %s439_s12, %s439_s12, %s440_s13  }
  0x1e   :  { %s441_s16 = smov [#allocation7]   ;;  %s409_s20 = scalar_lea.hbm %s542_s2, 4096 }
  0x1f   :  { %s33_s17 = sshll.u32 %s441_s16, 4  ;;  %p410_p11 = scmp.ne.s32.totalorder %s542_s2, %s409_s20  ;;  %s34_s17 = int_to_ptr.vmem [resolvable:$true] %s33_s17 }
  0x20   :  { %p413_p12 = scmp.lt.u32.totalorder %s409_s20, %s542_s2 }
  0x22   :  { %p415_p13 = pnand %p413_p12, %p410_p11 }
  0x24   :  { %418 = shalt.err (!%p415_p13)
}
  0x25   :  { %s419_s25 = scalar_lea.vmem %s34_s17, 4096  ;;  %p424_p1 = scmp.lt.s32.totalorder %s34_s17, %s34_s17 }
  0x26   :  { %p420_p0 = scmp.ne.s32.totalorder %s34_s17, %s419_s25  ;;  %p425_p2 = scmp.lt.s32.totalorder %s419_s25, %s419_s25 }
  0x28   :  { %p426_p3 = por %p425_p2, %p424_p1 }
  0x2a   :  { %p427_p4 = pnand %p426_p3, %p420_p0 }
  0x2c   :  { %430 = shalt.err (!%p427_p4)
}
  0x2d   :  { %s442_s1 = smov 256   ;;  %s443_s26 = smov 16  }
  0x2e   :  { %39 = dma.hbm_to_vmem [thread:$0]  %s542_s2, 4096, %s34_s17, [#allocation8], %s442_s1, %s442_s1, %s443_s26  }
  0x2f   :  { %433 = dma.done.wait [#allocation6], 256  }
  0x30   :  { %434 = vsyncadd [#allocation6], 4294967040 }
  0x31   :  { %435 = dma.done.wait [#allocation8], 4096  }
  0x32   :  { %436 = vsyncadd [#allocation8], 4294963200  ;;  %v444_v0 = vmov 0.0   ;;  %s56_s29 = sld [smem:[#allocation4]]  ;;  %s323_s30 = sld [smem:[#allocation4 + $0x1]]  ;;  %v103_v1 = vlaneseq  ;;  %v181_v28 = vld [vmem:[#allocation7 + $0x8] sm:$0xff] }
  0x33   :  { %54 = vst [vmem:[#allocation2] sm:$0xf] %v444_v0  ;;  %s324_s6 = sld [smem:[#allocation4 + $0x2]]  ;;  %s325_s7 = sld [smem:[#allocation4 + $0x3]]  ;;  %v445_v2 = vmov 1935823168  }
  0x34   :  { %v101_v3 = vunpack.c.l.s4 %v445_v2  ;;  %v104_v4 = vshrl.u32 %v103_v1, 7  ;;  %v57_v5 = vld [vmem:[#allocation5] ss:$4 sm:$0x3]  ;;  %v183_v29 = vld [vmem:[#allocation7 + $0x18] sm:$0xff]  ;;  %v180_v31 = vld [vmem:[#allocation7] sm:$0xff] }
  0x35   :  { %v59_v6 = vld [vmem:[#allocation5 + $0x8] ss:$4 sm:$0x3]  ;;  %v66_v11 = vld [vmem:[#allocation5 + $0x1] ss:$4 sm:$0x3]  ;;  %v331_v30 = vpack.c.bf16 %v183_v29, %v181_v28 }
  0x36   :  { %v68_v12 = vld [vmem:[#allocation5 + $0x9] ss:$4 sm:$0x3]  ;;  %v77_v17 = vld [vmem:[#allocation5 + $0x2] ss:$4 sm:$0x3]  ;;  %v102_v23 = vunpack.c.0.s8 %v101_v3 }
  0x37   :  { %v79_v18 = vld [vmem:[#allocation5 + $0xa] ss:$4 sm:$0x3]  ;;  %v88_v21 = vld [vmem:[#allocation5 + $0x3] ss:$4 sm:$0x3]  ;;  %332 = vmatprep.subr.bf16.mxu0 %v331_v30 }
  0x38   :  { %v60_v7 = vstv %s56_s29  ;;  %v69_v8 = vstv %s323_s30  ;;  %v90_v22 = vld [vmem:[#allocation5 + $0xb] ss:$4 sm:$0x3]  ;;  %v182_v32 = vld [vmem:[#allocation7 + $0x10] sm:$0xff]  ;;  %v185_v33 = vld [vmem:[#allocation7 + $0x28] sm:$0xff]  ;;  %v105_v41 = vsub.s32 %v102_v23, %v104_v4  ;;  %vm125_vm0 = vcmask 1041408  }
  0x39   :  { %v61_v9 = vmul.f32 %v60_v7, %v57_v5  ;;  %v62_v10 = vmul.f32 %v60_v7, %v59_v6  ;;  %v80_v13 = vstv %s324_s6  ;;  %v91_v14 = vstv %s325_s7  ;;  %v187_v37 = vld [vmem:[#allocation7 + $0x38] sm:$0xff]  ;;  %v184_v42 = vld [vmem:[#allocation7 + $0x20] sm:$0xff]  ;;  %v186_v43 = vld [vmem:[#allocation7 + $0x30] sm:$0xff]  ;;  %s326_s2 = sld [smem:[#allocation4 + $0x4]]  ;;  %s327_s8 = sld [smem:[#allocation4 + $0x5]] }
  0x3a   :  { %v70_v15 = vmul.f32 %v69_v8, %v66_v11  ;;  %v71_v16 = vmul.f32 %v69_v8, %v68_v12  ;;  %v81_v19 = vmul.f32 %v80_v13, %v77_v17  ;;  %v82_v20 = vmul.f32 %v80_v13, %v79_v18  ;;  %v96_v45 = vld [vmem:[#allocation2] sm:$0xf]  ;;  %v191_v2 = vld [vmem:[#allocation7 + $0x58] sm:$0xff]  ;;  %v190_v5 = vld [vmem:[#allocation7 + $0x50] sm:$0xff]  ;;  %s328_s12 = sld [smem:[#allocation4 + $0x6]] }
  0x3b   :  { %v92_v26 = vmul.f32 %v91_v14, %v88_v21  ;;  %v93_v27 = vmul.f32 %v91_v14, %v90_v22  ;;  %v333_v36 = vpack.c.bf16 %v182_v32, %v180_v31  ;;  %v335_v38 = vpack.c.bf16 %v187_v37, %v185_v33  ;;  %v189_v1 = vld [vmem:[#allocation7 + $0x48] sm:$0xff]  ;;  %v195_v8 = vld [vmem:[#allocation7 + $0x78] sm:$0xff]  ;;  %v194_v11 = vld [vmem:[#allocation7 + $0x70] sm:$0xff] }
  0x3c   :  { %v72_v24 = vadd.f32 %v70_v15, %v61_v9  ;;  %v73_v25 = vadd.f32 %v71_v16, %v62_v10  ;;  %v446_v47 = vmov 1983009808   ;;  %v337_v49 = vpack.c.bf16 %v186_v43, %v184_v42  ;;  %v193_v7 = vld [vmem:[#allocation7 + $0x68] sm:$0xff]  ;;  %v192_v10 = vld [vmem:[#allocation7 + $0x60] sm:$0xff]  ;;  %v199_v14 = vld [vmem:[#allocation7 + $0x98] sm:$0xff] }
  0x3d   :  { %334 = vmatpush1.bf16.xpose.msra.mxu0 %v333_v36  ;;  %v116_v48 = vunpack.c.l.s4 %v446_v47  ;;  %v339_v3 = vpack.c.bf16 %v191_v2, %v189_v1  ;;  %v343_v9 = vpack.c.bf16 %v195_v8, %v193_v7  ;;  %v345_v12 = vpack.c.bf16 %v194_v11, %v192_v10  ;;  %v197_v13 = vld [vmem:[#allocation7 + $0x88] sm:$0xff]  ;;  %v196_v16 = vld [vmem:[#allocation7 + $0x80] sm:$0xff]  ;;  %v198_v17 = vld [vmem:[#allocation7 + $0x90] sm:$0xff] }
  0x3e   :  { %v83_v34 = vadd.f32 %v81_v19, %v72_v24  ;;  %v84_v35 = vadd.f32 %v82_v20, %v73_v25  ;;  %336 = vmatprep.subr.bf16.mxu0 %v335_v38  ;;  %v347_v15 = vpack.c.bf16 %v199_v14, %v197_v13  ;;  %v349_v18 = vpack.c.bf16 %v198_v17, %v196_v16  ;;  %v201_v19 = vld [vmem:[#allocation7 + $0xa8] sm:$0xff]  ;;  %v203_v20 = vld [vmem:[#allocation7 + $0xb8] sm:$0xff]  ;;  %v200_v22 = vld [vmem:[#allocation7 + $0xa0] sm:$0xff] }
  0x3f   :  { %v117_v51 = vunpack.c.0.s8 %v116_v48  ;;  %v351_v21 = vpack.c.bf16 %v203_v20, %v201_v19  ;;  %v202_v23 = vld [vmem:[#allocation7 + $0xb0] sm:$0xff]  ;;  %v205_v24 = vld [vmem:[#allocation7 + $0xc8] sm:$0xff]  ;;  %v204_v28 = vld [vmem:[#allocation7 + $0xc0] sm:$0xff]  ;;  %vm315_vm1 = vcmask 1024  }
  0x40   :  { %v94_v39 = vadd.f32 %v92_v26, %v83_v34  ;;  %v95_v40 = vadd.f32 %v93_v27, %v84_v35  ;;  %v353_v25 = vpack.c.bf16 %v202_v23, %v200_v22  ;;  %v207_v26 = vld [vmem:[#allocation7 + $0xd8] sm:$0xff]  ;;  %v206_v29 = vld [vmem:[#allocation7 + $0xd0] sm:$0xff]  ;;  %v209_v30 = vld [vmem:[#allocation7 + $0xe8] sm:$0xff] }
  0x41   :  { %v513_v52 = vsub.s32 %v117_v51, %v104_v4  ;;  %v188_v4 = vld [vmem:[#allocation7 + $0x40] sm:$0xff]  ;;  %v355_v27 = vpack.c.bf16 %v207_v26, %v205_v24  ;;  %v211_v31 = vld [vmem:[#allocation7 + $0xf8] sm:$0xff]  ;;  %v357_v32 = vpack.c.bf16 %v206_v29, %v204_v28  ;;  %v210_v35 = vld [vmem:[#allocation7 + $0xf0] sm:$0xff] }
  0x42   :  { %v99_v44 = vcombine.low %v94_v39, %v95_v40  ;;  %v341_v6 = vpack.c.bf16 %v190_v5, %v188_v4  ;;  %v359_v33 = vpack.c.bf16 %v211_v31, %v209_v30  ;;  %v208_v34 = vld [vmem:[#allocation7 + $0xe0] sm:$0xff]  ;;  %v329_v8 = vld [vmem:[%s543_s3] ss:$0 sm:$0xff] }
  0x43   :  { %v361_v36 = vpack.c.bf16 %v210_v35, %v208_v34 }
  0x44   :  { %v106_v46 = vrot.slane %v99_v44, %v105_v41 }
  0x45   :  { %338 = vmatpush1.bf16.xpose.msra.mxu0 %v337_v49 }
  0x46   :  { %v108_v50 = vadd.f32 %v106_v46, %v96_v45  ;;  %340 = vmatprep.subr.bf16.mxu0 %v339_v3 }
  0x48   :  { %109 = vst [vmem:[#allocation2] sm:$0xf] %v108_v50 }
  0x4d   :  { %342 = vmatpush1.bf16.xpose.msra.mxu0 %v341_v6 }
  0x4e   :  { %344 = vmatprep.subr.bf16.mxu0 %v343_v9 }
  0x4f   :  { %v515_v53 = vld [vmem:[#allocation2] sm:$0xf] }
  0x50   :  { %v121_v54 = vrot.slane %v515_v53, %v513_v52  ;;  %v131_v55 = vmul.f32 %v515_v53, %v515_v53 }
  0x52   :  { %v122_v56 = vcombine.high %v121_v54, %v121_v54  ;;  %v126_v57 = vsel %vm125_vm0, %v121_v54, 0.0  ;;  %v139_v58 = vrot.slane %v131_v55, %v513_v52 }
  0x54   :  { %v127_v59 = vsel %vm125_vm0, %v122_v56, 0.0  ;;  %v140_v60 = vcombine.high %v139_v58, %v139_v58  ;;  %v143_v61 = vsel %vm125_vm0, %v139_v58, 0.0 }
  0x55   :  { %v128_v62 = vadd.f32 %v127_v59, %v126_v57  ;;  %346 = vmatpush1.bf16.xpose.msra.mxu0 %v345_v12  ;;  %v330_v12 = vld [vmem:[%s544_s4] ss:$0 sm:$0xff] }
  0x56   :  { %v144_v63 = vsel %vm125_vm0, %v140_v60, 0.0  ;;  %348 = vmatprep.subr.bf16.mxu0 %v347_v15 }
  0x57   :  { %129 = vadd.xlane.f32.xlu0 %v128_v62  ;;  %v145_v0 = vadd.f32 %v144_v63, %v143_v61  ;;  %v172_v61 = vstv %s326_s2 }
  0x5b   :  { %146 = vadd.xlane.f32.xlu0 %v145_v0  ;;  %v175_v0 = vstv %s327_s8 }
  0x5d   :  { %350 = vmatpush1.bf16.xpose.msra.mxu0 %v349_v18 }
  0x5e   :  { %352 = vmatprep.subr.bf16.mxu0 %v351_v21 }
  0x65   :  { %354 = vmatpush1.bf16.xpose.msra.mxu0 %v353_v25 }
  0x66   :  { %356 = vmatprep.subr.bf16.mxu0 %v355_v27 }
  0x6d   :  { %358 = vmatpush1.bf16.xpose.msra.mxu0 %v357_v32 }
  0x6e   :  { %360 = vmatprep.subr.bf16.mxu0 %v359_v33 }
  0x75   :  { %362 = vmatpush1.bf16.xpose.msra.mxu0 %v361_v36 }
  0xe4   :  { %v130_v37 = vpop.xlane.xlu0 %129 }
  0xe5   :  { %v148_v38 = vsel %vm125_vm0, %v130_v37, 0.0 }
  0xe6   :  { %v149_v39 = vrot.slane %v148_v38, 4 }
  0xe8   :  { %v150_v40 = vadd.f32 %v149_v39, %v148_v38  ;;  %v147_v41 = vpop.xlane.xlu0 %146 }
  0xe9   :  { %v156_v42 = vsel %vm125_vm0, %v147_v41, 0.0 }
  0xea   :  { %v151_v43 = vrot.slane %v150_v40, 2  ;;  %v157_v44 = vrot.slane %v156_v42, 4 }
  0xec   :  { %v152_v45 = vadd.f32 %v151_v43, %v150_v40  ;;  %v158_v46 = vadd.f32 %v157_v44, %v156_v42 }
  0xee   :  { %v153_v47 = vrot.slane %v152_v45, 1  ;;  %v159_v48 = vrot.slane %v158_v46, 2 }
  0xf0   :  { %v154_v49 = vadd.f32 %v153_v47, %v152_v45  ;;  %v160_v50 = vadd.f32 %v159_v48, %v158_v46 }
  0xf2   :  { %v155_v51 = vmul.f32 0.001953125, %v154_v49  ;;  %v161_v54 = vrot.slane %v160_v50, 1 }
  0xf4   :  { %v162_v55 = vadd.f32 %v161_v54, %v160_v50  ;;  %v164_v56 = vmul.f32 %v155_v51, %v155_v51 }
  0xf6   :  { %v163_v57 = vmul.f32 0.001953125, %v162_v55 }
  0xf8   :  { %v165_v58 = vsub.f32 %v163_v57, %v164_v56 }
  0xfa   :  { %v166_v59 = vmax.f32 %v165_v58, 0.0 }
  0xfc   :  { %v170_v60 = vadd.f32 1e-05, %v166_v59 }
  0xfe   :  { %373 = vrsqrt.f32 %v170_v60 }
 0x108   :  { %v374_v62 = vpop.eup %373 }
 0x109   :  { %v173_v63 = vmul.f32 %v374_v62, %v172_v61 }
 0x10b   :  { %v174_v1 = vmul.f32 %v173_v63, %v155_v51  ;;  %v177_v3 = vmul.f32 %v173_v63, %v515_v53 }
 0x10d   :  { %v176_v2 = vsub.f32 %v175_v0, %v174_v1 }
 0x10f   :  { %v178_v4 = vadd.f32 %v177_v3, %v176_v2 }
 0x111   :  { %v179_v5 = vmax.f32 %v178_v4, 0.0 }
 0x113   :  { %v226_v6 = vrot.slane %v179_v5, %v513_v52  ;;  %v312_v52 = vstv %s328_s12 }
 0x115   :  { %v227_v7 = vcombine.high %v226_v6, %v226_v6 }
 0x117   :  { %294 = vmatprep.mubr.f32.mxu0 %v227_v7 }
 0x118   :  { %295 = vmatmul.mubr.f32.vlgmr.msra.gmra.mrb[0].mxu0 %v226_v6 }
 0x1eb   :  { %v296_v9 = vpop.f32.mrb[0].mxu0 }
 0x1ec   :  { %v297_v10 = vadd.f32 %v329_v8, %v296_v9  ;;  %v298_v11 = vpop.f32.mrb[1].mxu0 }
 0x1ee   :  { %v300_v13 = vmax.f32 %v297_v10, 0.0 }
 0x1f0   :  { %v308_v53 = vmul.f32 %v330_v12, %v300_v13 }
 0x1f2   :  { %v309_v14 = vsel %vm125_vm0, %v308_v53, 0.0 }
 0x1f3   :  { %310 = vadd.xlane.f32.xlu1 %v309_v14 }
 0x280   :  { %v311_v15 = vpop.xlane.xlu1 %310 }
 0x281   :  { %v313_v16 = vadd.f32 %v312_v52, %v311_v15 }
 0x283   :  { %375 = vtanh.f32 %v313_v16 }
 0x28d   :  { %v376_v17 = vpop.eup %375 }
 0x28e   :  { %316 = vst.msk [vmem:[%s545_s5] sm:$0x3] %vm315_vm1, %v376_v17 }
 0x28f   :  { %321 = vsyncpa [#allocation6], 1 }
 0x290   :  { %322 = vsyncpa [#allocation8], 1 }

</bundles_post_ra>
